<compile_context>
chip_gen: v6e
topology: v6e:2x2x1
jax: 0.10.0
libtpu: 0.0.40
codegen_flags: <defaults>
</compile_context>

<pallas_src>
import jax
import jax.numpy as jnp
from jax.experimental import pallas as pl
from jax.experimental.pallas import tpu as pltpu


def _biasfree_ln_kernel(x_ref, w_ref, o_ref):
    # x_ref: (C, TILE_HW)   w_ref: (C, 1) f32   o_ref: (C, TILE_HW)
    x = x_ref[...].astype(jnp.float32)
    c = x.shape[0]
    inv_c = 1.0 / c
    # One-pass statistics: a single traversal produces sum and sum-of-squares.
    s1 = jnp.sum(x, axis=0, keepdims=True)           # (1, T)
    s2 = jnp.sum(x * x, axis=0, keepdims=True)       # (1, T)
    mu = s1 * inv_c
    var = jnp.maximum(s2 * inv_c - mu * mu, 0.0)      # biased var, guard cancellation
    inv = jax.lax.rsqrt(var + 1e-5)                   # (1, T) — EUP
    # BiasFree: normalize x itself (no mean subtraction), scale by weight, no bias.
    o_ref[...] = ((x * inv) * w_ref[...]).astype(o_ref.dtype)
    # TODO(synk): if profiling on v7x/bf16 shows the VALU slot binding, offload the
    # two channel sums to the idle MXU via ones(1,C) @ x / ones(1,C) @ (x*x).


def _round_up(n, m):
    return ((n + m - 1) // m) * m


def _pick_tile_hw(hw, c, itemsize, max_block_bytes, batch, min_grid_steps=8):
    """Lane-dense (multiple-of-128) tile under the per-block byte cap, shrunk so
    the grid has enough steps for pipelining / megacore sharding."""
    cap = max(128, ((max_block_bytes // (c * itemsize)) // 128) * 128)
    tile = min(cap, _round_up(hw, 128))
    # Ensure several grid steps per core so inbound DMA / compute / writeback overlap.
    while tile > 128 and batch * ((hw + tile - 1) // tile) < min_grid_steps:
        tile = max(128, (tile // 2 // 128) * 128)
    return tile


def biasfree_layernorm_pallas(x_nchw, weight, *, max_block_bytes=1 << 20,
                              donate_input=False):
    """BiasFree LayerNorm over the channel dim of an NCHW tensor."""
    b, c, h, w = x_nchw.shape
    hw = h * w
    itemsize = jnp.dtype(x_nchw.dtype).itemsize

    # Pure reshape (no data movement): keep native NCHW layout.
    x3 = x_nchw.reshape(b, c, hw)
    w2 = weight.astype(jnp.float32).reshape(c, 1)

    tile_hw = _pick_tile_hw(hw, c, itemsize, max_block_bytes, b)
    grid = (b, pl.cdiv(hw, tile_hw))  # ragged last block is masked on store

    # Generation-aware VMEM request: double-buffered in/out blocks + f32
    # intermediates with headroom; never ask for v7x's full 64 MiB.
    block_f32_bytes = c * tile_hw * 4
    vmem_limit = int(min(48 << 20, max(16 << 20, 12 * block_f32_bytes)))

    extra_kwargs = {}
    if donate_input:
        # Safe only if the caller does not reuse x afterwards.
        extra_kwargs["input_output_aliases"] = {0: 0}

    out = pl.pallas_call(
        _biasfree_ln_kernel,
        out_shape=jax.ShapeDtypeStruct((b, c, hw), x_nchw.dtype),
        grid_spec=pltpu.PrefetchScalarGridSpec(
            num_scalar_prefetch=0,
            grid=grid,
            in_specs=[
                # Leading batch dim squeezed out of the kernel Ref.
                pl.BlockSpec((None, c, tile_hw), lambda i, j: (i, 0, j)),
                pl.BlockSpec((c, 1), lambda i, j: (0, 0)),
            ],
            out_specs=pl.BlockSpec((None, c, tile_hw), lambda i, j: (i, 0, j)),
        ),
        compiler_params=pltpu.CompilerParams(
            dimension_semantics=("parallel", "parallel"),
            vmem_limit_bytes=vmem_limit,
        ),
        cost_estimate=pl.CostEstimate(
            flops=7 * b * c * hw,
            transcendentals=b * hw,
            bytes_accessed=2 * b * c * hw * itemsize,
        ),
        **extra_kwargs,
    )(x3, w2)

    return out.reshape(b, c, h, w)


def biasfree_layernorm_ref(x_nchw, weight):
    b, c, h, w = x_nchw.shape
    x = x_nchw.astype(jnp.float32)
    var = jnp.var(x, axis=1, keepdims=True)  # biased (ddof=0), mean internal only
    y = x / jnp.sqrt(var + 1e-5) * weight.astype(jnp.float32).reshape(1, c, 1, 1)
    return y.astype(x_nchw.dtype)


if __name__ == "__main__":
    key = jax.random.PRNGKey(0)
    k1, k2, k3 = jax.random.split(key, 3)

    # Case 1: baseline f32, small Restormer-like shape.
    B, C, H, W = 2, 4, 16, 16
    x = jax.random.normal(k1, (B, C, H, W), dtype=jnp.float32)
    weight = jnp.ones((C,), dtype=jnp.float32)  # per-module init: weight = ones, no bias
    out = jax.block_until_ready(biasfree_layernorm_pallas(x, weight))
    ref = biasfree_layernorm_ref(x, weight)
    assert out.shape == (B, C, H, W)
    assert jnp.allclose(out, ref, atol=1e-5, rtol=1e-5)

    # Case 2: bf16 I/O (f32 accumulation inside the kernel).
    xb = jax.random.normal(k2, (1, 8, 16, 16), dtype=jnp.float32).astype(jnp.bfloat16)
    wb = jnp.ones((8,), dtype=jnp.bfloat16)
    outb = jax.block_until_ready(biasfree_layernorm_pallas(xb, wb))
    refb = biasfree_layernorm_ref(xb, wb)
    assert jnp.allclose(outb.astype(jnp.float32), refb.astype(jnp.float32),
                        atol=5e-2, rtol=5e-2)

    # Case 3: ragged spatial extent (H*W not a multiple of 128) — exercises the
    # masked last block path (cdiv grid), no full-slab fallback.
    xr = jax.random.normal(k3, (1, 4, 12, 12), dtype=jnp.float32)
    wr = jnp.ones((4,), dtype=jnp.float32)
    outr = jax.block_until_ready(biasfree_layernorm_pallas(xr, wr))
    refr = biasfree_layernorm_ref(xr, wr)
    assert jnp.allclose(outr, refr, atol=1e-5, rtol=1e-5)

    print("KERNEL_OK")
</pallas_src>

<mosaic_0001>
module attributes {stable_mosaic.version = 11 : i64} {
  func.func @_biasfree_ln_kernel(%arg0: i32, %arg1: i32, %arg2: memref<1x4x128xf32, #tpu.memory_space<vmem>>, %arg3: memref<4x1xf32, #tpu.memory_space<vmem>>, %arg4: memref<1x4x128xf32, #tpu.memory_space<vmem>>) attributes {dimension_semantics = [#tpu.dimension_semantics<parallel>, #tpu.dimension_semantics<parallel>], iteration_bounds = array<i64: 2, 2>, scalar_prefetch = 0 : i64, scratch_operands = 0 : i64, tpu.core_type = #tpu.core_type<tc>, window_params = [{transform_indices = @transform_0, window_bounds = array<i64: 1, 4, 128>}, {pipeline_mode = #tpu.pipeline_mode<synchronous>, transform_indices = @transform_1, window_bounds = array<i64: 4, 1>}, {transform_indices = @transform_2, window_bounds = array<i64: 1, 4, 128>}]} {
    %c0 = arith.constant 0 : index
    %c0_0 = arith.constant 0 : index
    %c0_1 = arith.constant 0 : index
    %0 = vector.load %arg2[%c0, %c0_0, %c0_1] : memref<1x4x128xf32, #tpu.memory_space<vmem>>, vector<1x4x128xf32>
    %1 = vector.shape_cast %0 : vector<1x4x128xf32> to vector<4x128xf32>
    %cst = arith.constant dense<0.000000e+00> : vector<128xf32>
    %2 = vector.multi_reduction <add>, %1, %cst [0] : vector<4x128xf32> to vector<128xf32>
    %3 = vector.shape_cast %2 : vector<128xf32> to vector<1x128xf32>
    %4 = arith.mulf %1, %1 : vector<4x128xf32>
    %cst_2 = arith.constant dense<0.000000e+00> : vector<128xf32>
    %5 = vector.multi_reduction <add>, %4, %cst_2 [0] : vector<4x128xf32> to vector<128xf32>
    %6 = vector.shape_cast %5 : vector<128xf32> to vector<1x128xf32>
    %cst_3 = arith.constant 2.500000e-01 : f32
    %7 = vector.broadcast %cst_3 : f32 to vector<1x128xf32>
    %8 = arith.mulf %3, %7 : vector<1x128xf32>
    %cst_4 = arith.constant 2.500000e-01 : f32
    %9 = vector.broadcast %cst_4 : f32 to vector<1x128xf32>
    %10 = arith.mulf %6, %9 : vector<1x128xf32>
    %11 = arith.mulf %8, %8 : vector<1x128xf32>
    %12 = arith.subf %10, %11 : vector<1x128xf32>
    %cst_5 = arith.constant 0.000000e+00 : f32
    %13 = vector.broadcast %cst_5 : f32 to vector<1x128xf32>
    %14 = arith.maximumf %12, %13 : vector<1x128xf32>
    %cst_6 = arith.constant 9.99999974E-6 : f32
    %15 = vector.broadcast %cst_6 : f32 to vector<1x128xf32>
    %16 = arith.addf %14, %15 : vector<1x128xf32>
    %17 = math.rsqrt %16 : vector<1x128xf32>
    %18 = vector.broadcast %17 : vector<1x128xf32> to vector<4x128xf32>
    %19 = arith.mulf %1, %18 : vector<4x128xf32>
    %c0_7 = arith.constant 0 : index
    %c0_8 = arith.constant 0 : index
    %20 = vector.load %arg3[%c0_7, %c0_8] : memref<4x1xf32, #tpu.memory_space<vmem>>, vector<4x1xf32>
    %21 = vector.broadcast %20 : vector<4x1xf32> to vector<4x128xf32>
    %22 = arith.mulf %19, %21 : vector<4x128xf32>
    %c0_9 = arith.constant 0 : index
    %c0_10 = arith.constant 0 : index
    %c0_11 = arith.constant 0 : index
    %23 = vector.load %arg4[%c0_9, %c0_10, %c0_11] : memref<1x4x128xf32, #tpu.memory_space<vmem>>, vector<1x4x128xf32>
    %24 = vector.shape_cast %23 : vector<1x4x128xf32> to vector<4x128xf32>
    %25 = vector.shape_cast %22 : vector<4x128xf32> to vector<1x4x128xf32>
    tpu.vector_store %arg4[%c0_9, %c0_10, %c0_11], %25 {strides = array<i32>} : memref<1x4x128xf32, #tpu.memory_space<vmem>>, vector<1x4x128xf32>,
    return
  }
  func.func @transform_0(%arg0: i32, %arg1: i32) -> (i32, i32, i32) {
    %c0_i32 = arith.constant 0 : i32
    %c0_i32_0 = arith.constant 0 : i32
    return %arg0, %c0_i32, %arg1 : i32, i32, i32
  }
  func.func @transform_1(%arg0: i32, %arg1: i32) -> (i32, i32) {
    %c0_i32 = arith.constant 0 : i32
    %c0_i32_0 = arith.constant 0 : i32
    %c0_i32_1 = arith.constant 0 : i32
    return %c0_i32, %c0_i32_0 : i32, i32
  }
  func.func @transform_2(%arg0: i32, %arg1: i32) -> (i32, i32, i32) {
    %c0_i32 = arith.constant 0 : i32
    %c0_i32_0 = arith.constant 0 : i32
    return %arg0, %c0_i32, %arg1 : i32, i32, i32
  }
}

</mosaic_0001>

<bundles_post_ra>
// kernel: tpu_custom_call.1
= control target key start
LH: loop header
LB: loop body
LE: loop exit
PB: predicated region body
PF: predicated region fallthrough
CT: control target
= control target key end

     0   :  { %7 = vsyncpa [#allocation3], 0  ;;  %s715_s0 = inlined_call_operand.hbm [shape: f32[2,4,256], index: 0, kind: input, shape index: {}]   ;;  %s716_s1 = inlined_call_operand.vmem [shape: f32[4,1], index: 1, kind: input, shape index: {}]   ;;  %s717_s2 = inlined_call_operand.hbm [shape: f32[2,4,256], index: 2, kind: output, shape index: {}]  }
   0x1   :  { %9 = vsyncpa [#allocation3 + $0x1], 0 }
   0x2   :  { %10 = vsyncpa [#allocation4], 0 }
   0x3   :  { %12 = vsyncpa [#allocation4 + $0x1], 0  ;;  %s552_s9 = smov 0   ;;  %s554_s10 = smov 0  }
   0x4   :  { %s556_s11 = smov 0   ;;  %s558_s12 = smov 0  }
   0x5   :  { %s560_s13 = smov 0   ;;  %s562_s14 = smov 0  }
   0x6   :  { %s564_s15 = smov 0   ;;  %s566_s16 = smov 0  }
   0x7 LB: > { %s311_s17 = sadd.s32 4294967295, %s532_s16   ;;  %s312_s18 = sadd.s32 4294967294, %s532_s16   ;;  %s532_s16 = sphi %s566_s16, %s18_s16   ;;  %s528_s15 = sphi %s564_s15, %s730_s15   ;;  %s524_s14 = sphi %s562_s14, %s729_s14   ;;  %s520_s13 = sphi %s560_s13, %s728_s13   ;;  %s516_s12 = sphi %s558_s12, %s727_s12   ;;  %s512_s11 = sphi %s556_s11, %s726_s11   ;;  %s508_s10 = sphi %s554_s10, %s725_s10   ;;  %s504_s9 = sphi %s552_s9, %s724_s9  }
   0x8   : > { %s27_s19 = sadd.s32 1, %s524_s14  ;;  %s30_s20 = sadd.s32 1, %s528_s15 }
   0x9   : > { %p28_p0 = scmp.ge.s32.totalorder %s27_s19, 2  ;;  %s39_s21 = sadd.s32 1, %s512_s11 }
   0xa   : > { %p46_p1 = scmp.ne.s32.totalorder %s512_s11, %s508_s10  ;;  %p47_p2 = scmp.eq.s32.totalorder %s532_s16, 0 }
   0xb   : > { %s732_s19 = smov (%p28_p0, %s27_s19), 0  ;;  %s734_s20 = smov (!%p28_p0, %s30_s20), %s528_s15 }
   0xc   : > { %s35_s22 = ssub.s32 %s524_s14, %s732_s19  ;;  %p605_p3 = por %p47_p2, %p46_p1 }
   0xd   : > { %p32_p4 = scmp.ge.s32.totalorder %s734_s20, 2  ;;  %p52_p5 = scmp.ne.s32.totalorder %s508_s10, %s504_s9 }
   0xe   : > { %p53_p6 = scmp.eq.s32.totalorder %s311_s17, 0  ;;  %p99_p7 = scmp.eq.s32.totalorder %s311_s17, 3 }
   0xf   : > { %s736_s20 = smov (%p32_p4, %s734_s20), 0  ;;  %p105_p10 = scmp.eq.s32.totalorder %s312_s18, 3 }
  0x10   : > { %p613_p8 = por %p53_p6, %p52_p5  ;;  %p617_p9 = por %p99_p7, %p46_p1 }
  0x11   : > { %s34_s26 = ssub.s32 %s528_s15, %s736_s20  ;;  %p623_p12 = por %p105_p10, %p52_p5 }
  0x12   : > { %s36_s27 = sor.u32 %s35_s22, %s34_s26  ;;  %p338_p13 = scmp.lt.s32.totalorder %s532_s16, 4 }
  0x13   : > { %p37_p11 = scmp.eq.s32.totalorder %s36_s27, 0  ;;  %s128_s29 = sand.u32 1, %s512_s11  }
  0x14   : > { %s721_s28 = scalar_select %p623_p12, 1, 0 }
  0x15   : > { %s630_s30 = scalar_select %p37_p11, %s512_s11, %s39_s21  }
  0x16   : > { %s315_s3 = sshll.u32 %s128_s29, 2  ;;  %s316_s4 = sshll.u32 %s528_s15, 1 }
  0x17   : > { %s137_s5 = sadd.s32 %s524_s14, %s316_s4  ;;  %s132_s6 = scalar_lea.vmem [#allocation2], %s315_s3 }
  0x18   : > { %s141_s7 = sshll.u32 %s132_s6, 4  ;;  %s317_s8 = sshll.u32 %s137_s5, 6  ;;  %s142_s7 = int_to_ptr.vmem [resolvable:$true] %s141_s7 }
  0x19   : > { %s139_s22 = scalar_lea.hbm %s715_s0, %s317_s8  ;;  %p639_p0 = pnand %p338_p13, %p605_p3 }
  0x1a   : > { %p318_p1 = scmp.ge.s32.totalorder %s532_s16, 1  ;;  %p146_p2 = scmp.lt.s32.totalorder %s532_s16, 5 }
  0x1b   : > { %s129_s21 = scalar_lea.sflag [#allocation3], %s128_s29  ;;  %p410_p4 = pneg %p639_p0 }
  0x1c   : > { %s421_s27 = scalar_lea.vmem %s142_s7, 64  ;;  %s534_s3 = smov [#allocation2]  }
  0x1d   : > { %p422_p5 = scmp.ne.s32.totalorder %s142_s7, %s421_s27  ;;  %s426_s4 = sshll.u32 %s534_s3, 4  ;;  %s427_s4 = int_to_ptr.vmem [resolvable:$false] %s426_s4 }
  0x1e   : > { %s428_s5 = scalar_lea.vmem %s427_s4, 128  ;;  %p429_p10 = scmp.lt.s32.totalorder %s142_s7, %s427_s4 }
  0x1f   : > { %p424_p6 = pnand %p422_p5, %p410_p4  ;;  %p430_p11 = scmp.lt.s32.totalorder %s428_s5, %s421_s27 }
  0x21   : > { %p425_p7 = pneg %p424_p6  ;;  %p431_p3 = por %p430_p11, %p429_p10 }
  0x23   : > { %p432_p13 = pnand %p431_p3, %p425_p7 }
  0x25   : > { %435 = shalt.err (!%p432_p13)
}
  0x26   : > { %333 = dma.hbm_to_vmem [thread:$0]  (!%p639_p0), %s139_s22, 64, %s142_s7, %s129_s21  }
  0x27   : > { %p147_p12 = pnand %p318_p1, %p146_p2 }
  0x28   : > { %s654_s23 = sand.u32 (!%p147_p12), 1, %s508_s10  }
  0x29   : > { %150 = sbr.rel (%p147_p12) target bundleno = 188 (0xbc), region = 28  ;;  %s319_s29 = sshll.u32 (!%p147_p12), %s654_s23, 2 }
  0x2a   : > { %s153_s6 = scalar_lea.sflag (!%p147_p12), [#allocation3], %s654_s23  ;;  %s156_s8 = scalar_lea.vmem (!%p147_p12), [#allocation2], %s319_s29 }
  0x2e   : > { %495 = dma.done.wait (%p613_p8), %s153_s6, 64  }
  0x2f   : > { %497 = vsyncadd (%p613_p8), %s153_s6, 4294967232  ;;  %v535_v0 = vmov 0   ;;  %v202_v1 = vld [vmem:[%s716_s1] sm:$0xf]  ;;  %vm178_vm0 = vcmask 1043456   ;;  %s322_s24 = sshll.u32 %s520_s13, 1 }
  0x30   : > { %405 = vset.pattern.permute.xlu0 %v535_v0  ;;  %v177_v2 = vld [vmem:[%s156_s8] sm:$0xf]  ;;  %s222_s18 = sadd.s32 %s516_s12, %s322_s24  ;;  %s176_s26 = scalar_lea.vmem [#allocation5], %s319_s29 }
  0x31   : > { %205 = vperm.xlu0 %405, %v202_v1   ;;  %v179_v3 = vsel %vm178_vm0, %v177_v2, 0.0  ;;  %v186_v4 = vmul.f32 %v177_v2, %v177_v2  ;;  %s323_s22 = sshll.u32 %s222_s18, 6  ;;  %s226_s21 = sshll.u32 %s176_s26, 4  ;;  %s227_s21 = int_to_ptr.vmem [resolvable:$true] %s226_s21 }
  0x32   : > { %v180_v5 = vrot.slane %v179_v3, 4  ;;  %s224_s4 = scalar_lea.hbm %s717_s2, %s323_s22  ;;  %s211_s5 = scalar_lea.sflag [#allocation4], %s654_s23 }
  0x33   : > { %v187_v6 = vsel %vm178_vm0, %v186_v4, 0.0  ;;  %s436_s6 = scalar_lea.vmem %s227_s21, 64  ;;  %s536_s12 = smov [#allocation5]  }
  0x34   : > { %v181_v7 = vadd.f32 %v180_v5, %v179_v3  ;;  %v188_v8 = vrot.slane %v187_v6, 4  ;;  %p437_p8 = scmp.ne.s32.totalorder %s227_s21, %s436_s6  ;;  %s440_s13 = sshll.u32 %s536_s12, 4  ;;  %s441_s13 = int_to_ptr.vmem [resolvable:$false] %s440_s13 }
  0x35   : > { %s442_s8 = scalar_lea.vmem %s441_s13, 128  ;;  %p443_p1 = scmp.lt.s32.totalorder %s227_s21, %s441_s13 }
  0x36   : > { %v182_v9 = vrot.slane %v181_v7, 2  ;;  %v189_v10 = vadd.f32 %v188_v8, %v187_v6  ;;  %p438_p12 = pnand %p437_p8, %p617_p9  ;;  %p444_p2 = scmp.lt.s32.totalorder %s442_s8, %s436_s6 }
  0x38   : > { %v183_v11 = vadd.f32 %v182_v9, %v181_v7  ;;  %v190_v12 = vrot.slane %v189_v10, 2  ;;  %p439_p0 = pneg %p438_p12  ;;  %p445_p4 = por %p444_p2, %p443_p1 }
  0x3a   : > { %v184_v13 = vrot.slane %v183_v11, 1  ;;  %v191_v14 = vadd.f32 %v190_v12, %v189_v10  ;;  %p446_p5 = pnand %p445_p4, %p439_p0 }
  0x3c   : > { %v185_v15 = vadd.f32 %v184_v13, %v183_v11  ;;  %v192_v16 = vrot.slane %v191_v14, 1 }
  0x3e   : > { %v193_v17 = vadd.f32 %v192_v16, %v191_v14  ;;  %v194_v18 = vmul.f32 0.25, %v185_v15 }
  0x40   : > { %v195_v19 = vmul.f32 0.25, %v193_v17  ;;  %v196_v20 = vmul.f32 %v194_v18, %v194_v18 }
  0x42   : > { %v197_v21 = vsub.f32 %v195_v19, %v196_v20 }
  0x44   : > { %v198_v22 = vmax.f32 %v197_v21, 0.0 }
  0x46   : > { %v199_v23 = vadd.f32 1e-05, %v198_v22 }
  0x48   : > { %406 = vrsqrt.f32 %v199_v23 }
  0x55   : > { %v407_v24 = vpop.eup %406 }
  0x56   : > { %v201_v25 = vmul.f32 %v407_v24, %v177_v2 }
  0xac   : > { %v206_v26 = vpop.permute.xlu0 %205 }
  0xad   : > { %v208_v27 = vmul.f32 %v206_v26, %v201_v25 }
  0xaf   : > { %209 = vst [vmem:[%s176_s26] sm:$0xf] %v208_v27 }
  0xb0   : > { %449 = shalt.err (!%p446_p5)
}
  0xb1   : > { %s450_s29 = scalar_lea.hbm %s224_s4, 64  ;;  %s454_s17 = scalar_lea.hbm %s717_s2, 256 }
  0xb2   : > { %p451_p6 = scmp.ne.s32.totalorder %s224_s4, %s450_s29  ;;  %p455_p11 = scmp.lt.s32.totalorder %s224_s4, %s717_s2 }
  0xb3   : > { %p456_p3 = scmp.lt.s32.totalorder %s454_s17, %s450_s29 }
  0xb4   : > { %p452_p7 = pnand %p451_p6, %p617_p9 }
  0xb5   : > { %p457_p13 = por %p456_p3, %p455_p11 }
  0xb6   : > { %p453_p10 = pneg %p452_p7 }
  0xb8   : > { %p458_p8 = pnand %p457_p13, %p453_p10 }
  0xba   : > { %461 = shalt.err (!%p458_p8)
}
  0xbb   : > { %328 = dma.vmem_to_hbm [thread:$0]  (%p617_p9), %s227_s21, 64, %s224_s4, %s211_s5  }
  0xbc PF: > { %p339_p12 = scmp.ge.s32.totalorder %s532_s16, 2  ;;  %s238_s22 = sand.u32 1, %s504_s9  }
  0xbd   : > { %p723_p0 = scmp.ne.s32.totalorder %s721_s28, 0  ;;  %s239_s26 = scalar_lea.sflag [#allocation4], %s238_s22 }
  0xbf   : > { %p335_p1 = pnand %p339_p12, %p723_p0 }
  0xc1   : > { %p336_p2 = pneg %p335_p1 }
  0xc3   : > { %499 = dma.done.wait (%p336_p2), %s239_s26, 64  }
  0xc4   : > { %501 = vsyncadd (%p336_p2), %s239_s26, 4294967232  ;;  %s18_s16 = sadd.s32 1, %s532_s16   ;;  %s724_s9 = smov %s508_s10 }
  0xc5   : > { %p15_p4 = scmp.ge.s32.totalorder %s18_s16, 6   ;;  %s725_s10 = smov %s512_s11 }
  0xc6   : > { %s726_s11 = smov %s630_s30  ;;  %s727_s12 = smov %s524_s14 }
  0xc7   : > { %s728_s13 = smov %s528_s15  ;;  %s729_s14 = smov %s732_s19 }
  0xc8   : > { %s730_s15 = smov %s736_s20  ;;  %17 = sbr.rel (!%p15_p4) target bundleno = 7 (0x7), region = 73 }
  0xcd   :  { %244 = vsyncpa [#allocation3], 1 }
  0xce   :  { %246 = vsyncpa [#allocation3 + $0x1], 1 }
  0xcf   :  { %247 = vsyncpa [#allocation4], 1 }
  0xd0   :  { %249 = vsyncpa [#allocation4 + $0x1], 1 }

</bundles_post_ra>
